<compile_context>
chip_gen: v5e
topology: v5e:2x2
jax: 0.10.0
libtpu: 0.0.40
codegen_flags: <defaults>
</compile_context>

<pallas_src>
import functools
import math

import jax
import jax.numpy as jnp
from jax.experimental import pallas as pl
from jax.experimental.pallas import tpu as pltpu

CHANNELS = 128


def _rup(x, m):
    return ((x + m - 1) // m) * m


# --------------------------------------------------------------------------- Pallas kernels

def _mm_kernel(a_ref, b_ref, t_ref, o_ref, *, relu):
    """out = act(A @ B + bias); f32 accumulation directly in o_ref across k."""
    k = pl.program_id(2)

    @pl.when(k == 0)
    def _():
        o_ref[...] = jnp.zeros_like(o_ref)

    o_ref[...] += jnp.dot(a_ref[...], b_ref[...], preferred_element_type=jnp.float32)

    @pl.when(k == pl.num_programs(2) - 1)
    def _():
        y = o_ref[...] + t_ref[...]
        if relu:
            y = jnp.maximum(y, 0.0)
        o_ref[...] = y


def _mm_res_kernel(a_ref, b_ref, t_ref, r_ref, o_ref, *, relu):
    """Same as _mm_kernel, with a fused residual add in the epilogue."""
    k = pl.program_id(2)

    @pl.when(k == 0)
    def _():
        o_ref[...] = jnp.zeros_like(o_ref)

    o_ref[...] += jnp.dot(a_ref[...], b_ref[...], preferred_element_type=jnp.float32)

    @pl.when(k == pl.num_programs(2) - 1)
    def _():
        y = o_ref[...] + t_ref[...] + r_ref[...]
        if relu:
            y = jnp.maximum(y, 0.0)
        o_ref[...] = y


def _conv3s1_kernel(x_ref, w_ref, t_ref, o_ref, *, relu):
    """Direct 3x3 / stride-1 conv on one spatially pre-padded NHWC image, one Cout tile.
    No im2col materialization: 9 shifted VMEM views feed 9 accumulated MXU matmuls."""
    hp, wp, cin = x_ref.shape[1], x_ref.shape[2], x_ref.shape[3]
    ho, wo = hp - 2, wp - 2
    tn = o_ref.shape[-1]
    xw = x_ref[0]                                              # (hp, wp, cin)
    acc = None
    for idx in range(9):
        dy, dx = idx // 3, idx % 3
        a = xw[dy:dy + ho, dx:dx + wo, :].reshape(ho * wo, cin).astype(jnp.bfloat16)
        d = jnp.dot(a, w_ref[idx], preferred_element_type=jnp.float32)
        acc = d if acc is None else acc + d
    y = acc + t_ref[...]
    if relu:
        y = jnp.maximum(y, 0.0)
    o_ref[...] = y.reshape(1, ho, wo, tn)


def _conv3s1_res_kernel(x_ref, w_ref, t_ref, r_ref, o_ref, *, relu):
    hp, wp, cin = x_ref.shape[1], x_ref.shape[2], x_ref.shape[3]
    ho, wo = hp - 2, wp - 2
    tn = o_ref.shape[-1]
    xw = x_ref[0]
    acc = None
    for idx in range(9):
        dy, dx = idx // 3, idx % 3
        a = xw[dy:dy + ho, dx:dx + wo, :].reshape(ho * wo, cin).astype(jnp.bfloat16)
        d = jnp.dot(a, w_ref[idx], preferred_element_type=jnp.float32)
        acc = d if acc is None else acc + d
    y = (acc + t_ref[...]).reshape(1, ho, wo, tn) + r_ref[...]
    if relu:
        y = jnp.maximum(y, 0.0)
    o_ref[...] = y


def _resize_kernel(x_ref, ah_ref, awt_ref, o_ref):
    """Bilinear (align_corners=True) resize of one 2-D map: out = Ah @ x @ Aw^T (fused)."""
    t = jnp.dot(ah_ref[...], x_ref[0], preferred_element_type=jnp.float32)
    o_ref[0] = jnp.dot(t, awt_ref[...], preferred_element_type=jnp.float32)


# --------------------------------------------------------------------------- GEMM wrappers

def _gemm_tiles(M, Kp, Np):
    tm = min(256, _rup(M, 8))           # right-size TM to the actual M
    mp = _rup(M, tm)
    tn = 256 if Np % 256 == 0 else 128
    tk = Kp if Kp <= 512 else 512       # Kp is padded to a 512 multiple when > 512
    return tm, mp, tn, tk


@functools.partial(jax.jit, static_argnames=("relu",))
def _mm_affine(a, b, t, *, relu):
    M, K = a.shape
    Kp, Np = b.shape
    tm, Mp, tn, tk = _gemm_tiles(M, Kp, Np)
    a_p = jnp.pad(a, ((0, Mp - M), (0, Kp - K))).astype(jnp.bfloat16)
    grid = (Mp // tm, Np // tn, Kp // tk)
    out = pl.pallas_call(
        functools.partial(_mm_kernel, relu=relu),
        out_shape=jax.ShapeDtypeStruct((Mp, Np), jnp.float32),
        grid_spec=pltpu.PrefetchScalarGridSpec(
            num_scalar_prefetch=0,
            grid=grid,
            in_specs=[pl.BlockSpec((tm, tk), lambda i, j, k: (i, k)),
                      pl.BlockSpec((tk, tn), lambda i, j, k: (k, j)),
                      pl.BlockSpec((1, tn), lambda i, j, k: (0, j))],
            out_specs=pl.BlockSpec((tm, tn), lambda i, j, k: (i, j)),
        ),
        compiler_params=pltpu.CompilerParams(
            dimension_semantics=("parallel", "parallel", "arbitrary")),
    )(a_p, b, t)
    return out[:M]


@functools.partial(jax.jit, static_argnames=("relu",))
def _mm_res_affine(a, b, t, r, *, relu):
    M, K = a.shape
    Kp, Np = b.shape
    tm, Mp, tn, tk = _gemm_tiles(M, Kp, Np)
    a_p = jnp.pad(a, ((0, Mp - M), (0, Kp - K))).astype(jnp.bfloat16)
    r_p = jnp.pad(r, ((0, Mp - M), (0, Np - r.shape[1])))
    grid = (Mp // tm, Np // tn, Kp // tk)
    out = pl.pallas_call(
        functools.partial(_mm_res_kernel, relu=relu),
        out_shape=jax.ShapeDtypeStruct((Mp, Np), jnp.float32),
        grid_spec=pltpu.PrefetchScalarGridSpec(
            num_scalar_prefetch=0,
            grid=grid,
            in_specs=[pl.BlockSpec((tm, tk), lambda i, j, k: (i, k)),
                      pl.BlockSpec((tk, tn), lambda i, j, k: (k, j)),
                      pl.BlockSpec((1, tn), lambda i, j, k: (0, j)),
                      pl.BlockSpec((tm, tn), lambda i, j, k: (i, j))],
            out_specs=pl.BlockSpec((tm, tn), lambda i, j, k: (i, j)),
        ),
        compiler_params=pltpu.CompilerParams(
            dimension_semantics=("parallel", "parallel", "arbitrary")),
    )(a_p, b, t, r_p)
    return out[:M]


@functools.partial(jax.jit, static_argnames=("relu",))
def _conv3s1(x, w3, t, *, relu):
    xp = jnp.pad(x, ((0, 0), (1, 1), (1, 1), (0, 0)))
    N, Hp, Wp, Cin = xp.shape
    Ho, Wo = Hp - 2, Wp - 2
    Np = w3.shape[-1]
    tn = 128
    return pl.pallas_call(
        functools.partial(_conv3s1_kernel, relu=relu),
        out_shape=jax.ShapeDtypeStruct((N, Ho, Wo, Np), jnp.float32),
        grid_spec=pltpu.PrefetchScalarGridSpec(
            num_scalar_prefetch=0,
            grid=(N, Np // tn),
            in_specs=[pl.BlockSpec((1, Hp, Wp, Cin), lambda n, j: (n, 0, 0, 0)),
                      pl.BlockSpec((9, Cin, tn), lambda n, j: (0, 0, j)),
                      pl.BlockSpec((1, tn), lambda n, j: (0, j))],
            out_specs=pl.BlockSpec((1, Ho, Wo, tn), lambda n, j: (n, 0, 0, j)),
        ),
        compiler_params=pltpu.CompilerParams(
            dimension_semantics=("parallel", "parallel")),
    )(xp, w3, t)


@functools.partial(jax.jit, static_argnames=("relu",))
def _conv3s1_res(x, w3, t, r, *, relu):
    xp = jnp.pad(x, ((0, 0), (1, 1), (1, 1), (0, 0)))
    N, Hp, Wp, Cin = xp.shape
    Ho, Wo = Hp - 2, Wp - 2
    Np = w3.shape[-1]
    tn = 128
    r_p = jnp.pad(r, ((0, 0), (0, 0), (0, 0), (0, Np - r.shape[-1])))
    return pl.pallas_call(
        functools.partial(_conv3s1_res_kernel, relu=relu),
        out_shape=jax.ShapeDtypeStruct((N, Ho, Wo, Np), jnp.float32),
        grid_spec=pltpu.PrefetchScalarGridSpec(
            num_scalar_prefetch=0,
            grid=(N, Np // tn),
            in_specs=[pl.BlockSpec((1, Hp, Wp, Cin), lambda n, j: (n, 0, 0, 0)),
                      pl.BlockSpec((9, Cin, tn), lambda n, j: (0, 0, j)),
                      pl.BlockSpec((1, tn), lambda n, j: (0, j)),
                      pl.BlockSpec((1, Ho, Wo, tn), lambda n, j: (n, 0, 0, j))],
            out_specs=pl.BlockSpec((1, Ho, Wo, tn), lambda n, j: (n, 0, 0, j)),
        ),
        compiler_params=pltpu.CompilerParams(
            dimension_semantics=("parallel", "parallel")),
    )(xp, w3, t, r_p)


# --------------------------------------------------------------------------- bilinear resize

@functools.lru_cache(maxsize=None)
def _interp_matrix(in_size, out_size):
    """Row-interpolation matrix for bilinear resize with align_corners=True; (out, in)."""
    if in_size == 1:
        return jnp.ones((out_size, 1), jnp.float32)
    pos = jnp.arange(out_size, dtype=jnp.float32) * (in_size - 1) / max(out_size - 1, 1)
    lo = jnp.clip(jnp.floor(pos).astype(jnp.int32), 0, in_size - 1)
    hi = jnp.clip(lo + 1, 0, in_size - 1)
    frac = pos - lo.astype(jnp.float32)
    return (jax.nn.one_hot(lo, in_size, dtype=jnp.float32) * (1.0 - frac)[:, None]
            + jax.nn.one_hot(hi, in_size, dtype=jnp.float32) * frac[:, None])


@jax.jit
def _resize_call(x3, ah, awt):
    NC, H, W = x3.shape
    oh, ow = ah.shape[0], awt.shape[1]
    return pl.pallas_call(
        _resize_kernel,
        out_shape=jax.ShapeDtypeStruct((NC, oh, ow), jnp.float32),
        grid_spec=pltpu.PrefetchScalarGridSpec(
            num_scalar_prefetch=0,
            grid=(NC,),
            in_specs=[pl.BlockSpec((1, H, W), lambda i: (i, 0, 0)),
                      pl.BlockSpec((oh, H), lambda i: (0, 0)),
                      pl.BlockSpec((W, ow), lambda i: (0, 0))],
            out_specs=pl.BlockSpec((1, oh, ow), lambda i: (i, 0, 0)),
        ),
        compiler_params=pltpu.CompilerParams(dimension_semantics=("parallel",)),
    )(x3, ah, awt)


def bilinear_resize_nhwc(x, out_h, out_w):
    """F.interpolate(..., mode='bilinear', align_corners=True) on NHWC tensors."""
    N, H, W, C = x.shape
    if (H, W) == (out_h, out_w):
        return x
    ah = _interp_matrix(H, out_h)
    awt = _interp_matrix(W, out_w).T
    xc = jnp.transpose(x, (0, 3, 1, 2)).reshape(N * C, H, W)
    y = _resize_call(xc, ah, awt)
    return jnp.transpose(y.reshape(N, C, out_h, out_w), (0, 2, 3, 1))


# --------------------------------------------------------------------------- conv glue (NHWC)

def _im2col(x, k, stride, pad):
    """NHWC im2col, used only for small strided / lane-unfriendly 3x3 convs.
    K ordering = (dy, dx, cin), cin fastest — matches the prepped weights."""
    N, H, W, C = x.shape
    xp = jnp.pad(x, ((0, 0), (pad, pad), (pad, pad), (0, 0)))
    Ho = (H + 2 * pad - k) // stride + 1
    Wo = (W + 2 * pad - k) // stride + 1
    cols = []
    for dy in range(k):
        for dx in range(k):
            cols.append(xp[:, dy:dy + (Ho - 1) * stride + 1:stride,
                           dx:dx + (Wo - 1) * stride + 1:stride, :])
    a = jnp.concatenate(cols, axis=-1).reshape(N * Ho * Wo, k * k * C)
    return a, Ho, Wo


def conv_bn(p, x, stride=1, padding=0, relu=False, residual=None):
    """Conv2d + folded eval-mode BN affine + optional fused residual / ReLU.
    x / residual / output: NHWC float32."""
    N, H, W, C = x.shape
    k, cout = p["k"], p["cout"]
    assert C == p["cin"], (C, p["cin"])

    # Direct (no im2col) Pallas conv for the dominant 3x3 / stride-1 / 8-aligned cases.
    if k == 3 and stride == 1 and padding == 1 and W % 8 == 0:
        if residual is None:
            y = _conv3s1(x, p["w3"], p["bias"], relu=relu)
        else:
            y = _conv3s1_res(x, p["w3"], p["bias"], residual, relu=relu)
        return y if y.shape[-1] == cout else y[..., :cout]

    # GEMM path (1x1 convs, plus tiny/strided 3x3 fallbacks via im2col).
    if k == 1 and padding == 0:
        xs = x if stride == 1 else x[:, ::stride, ::stride, :]
        Ho, Wo = xs.shape[1], xs.shape[2]
        a = xs.reshape(N * Ho * Wo, C)
    else:
        a, Ho, Wo = _im2col(x, k, stride, padding)
    if residual is None:
        y = _mm_affine(a, p["b"], p["bias"], relu=relu)
    else:
        y = _mm_res_affine(a, p["b"], p["bias"],
                           residual.reshape(N * Ho * Wo, residual.shape[-1]), relu=relu)
    if y.shape[1] != cout:
        y = y[:, :cout]
    return y.reshape(N, Ho, Wo, cout)


# TODO(synk): max/avg pooling use XLA reduce_window (no dedicated Pallas kernel).
def max_pool_nhwc(x, k, s, pad):
    return jax.lax.reduce_window(x, -jnp.inf, jax.lax.max,
                                 (1, k, k, 1), (1, s, s, 1),
                                 [(0, 0), (pad, pad), (pad, pad), (0, 0)])


def avg_pool_nhwc(x, k, s, pad):
    sums = jax.lax.reduce_window(x, 0.0, jax.lax.add,
                                 (1, k, k, 1), (1, s, s, 1),
                                 [(0, 0), (pad, pad), (pad, pad), (0, 0)])
    return sums / float(k * k)


def pixel_shuffle_nhwc(x, r=2):
    N, H, W, C = x.shape
    co = C // (r * r)
    x = x.reshape(N, H, W, co, r, r)
    x = x.transpose(0, 1, 4, 2, 5, 3)
    return x.reshape(N, H * r, W * r, co)


# --------------------------------------------------------------------------- parameters

class ParamFactory:
    def __init__(self, seed=0):
        self.key = jax.random.PRNGKey(seed)
        self.count = 0

    def normal(self, shape, scale=0.05):
        self.count += 1
        k = jax.random.fold_in(self.key, self.count)
        return (scale * jax.random.normal(k, shape)).astype(jnp.float32)


def _prep_conv(w, scale, shift, k):
    """Fold BN scale into the weights, pre-transpose / pre-pad / pre-cast once at build time."""
    cout, cin = w.shape[0], w.shape[1]
    w = w * scale[:, None, None, None]                                # fold BN scale (exact)
    Np = _rup(cout, 128)
    w3 = jnp.transpose(w, (2, 3, 1, 0)).reshape(k * k, cin, cout)     # (k*k, cin, cout)
    w3 = jnp.pad(w3, ((0, 0), (0, 0), (0, Np - cout)))
    K = k * k * cin
    Kp = _rup(K, 128) if K <= 512 else _rup(K, 512)
    b = jnp.pad(w3.reshape(K, Np), ((0, Kp - K), (0, 0))).astype(jnp.bfloat16)
    p = {"b": b,
         "bias": jnp.pad(shift, (0, Np - cout)).reshape(1, Np).astype(jnp.float32),
         "k": k, "cin": cin, "cout": cout}
    if k == 3:
        p["w3"] = w3.astype(jnp.bfloat16)
    return p


def make_conv(pf, cin, cout, k, bn=True, bias=False, fold_tail=0):
    std = math.sqrt(1.0 / (cin * k * k))
    w = pf.normal((cout, cin, k, k), std)
    if bn:  # eval-mode BN (and any conv bias) folded into a per-output-channel affine
        scale = 1.0 + pf.normal((cout,), 0.1)
        shift = pf.normal((cout,), 0.1)
    else:
        scale = jnp.ones((cout,), jnp.float32)
        shift = pf.normal((cout,), 0.1) if bias else jnp.zeros((cout,), jnp.float32)
    if fold_tail:
        # Last `fold_tail` input channels all receive the same broadcast 1-channel map;
        # fold them into one equivalent input channel (exact).
        w = jnp.concatenate([w[:, :cin - fold_tail],
                             w[:, cin - fold_tail:].sum(axis=1, keepdims=True)], axis=1)
    return _prep_conv(w, scale, shift, k)


# --------------------------------------------------------------------------- Res2Net50-v1b encoder

def make_bottle2neck(pf, inplanes, planes, stride, downsample, stype,
                     base_width=26, scale=4):
    width = int(math.floor(planes * base_width / 64.0))
    return {
        "conv1": make_conv(pf, inplanes, width * scale, 1),
        "convs": [make_conv(pf, width, width, 3) for _ in range(scale - 1)],
        "conv3": make_conv(pf, width * scale, planes * 4, 1),
        "down": make_conv(pf, inplanes, planes * 4, 1) if downsample else None,
        "meta": (width, scale, stride, stype),
    }


def bottle2neck(p, x):
    width, scale, stride, stype = p["meta"]
    out = conv_bn(p["conv1"], x, 1, 0, relu=True)
    spx = [out[..., i * width:(i + 1) * width] for i in range(scale)]
    pieces, sp = [], None
    for i in range(scale - 1):
        sp = spx[i] if (i == 0 or stype == "stage") else sp + spx[i]
        sp = conv_bn(p["convs"][i], sp, stride, 1, relu=True)
        pieces.append(sp)
    if stype == "normal":
        pieces.append(spx[scale - 1])
    else:
        pieces.append(avg_pool_nhwc(spx[scale - 1], 3, stride, 1))
    out = jnp.concatenate(pieces, axis=-1)
    residual = x
    if p["down"] is not None:
        r = avg_pool_nhwc(x, stride, stride, 0) if stride != 1 else x
        residual = conv_bn(p["down"], r, 1, 0, relu=False)
    # conv3 + BN + residual + ReLU fused into one Pallas GEMM epilogue
    return conv_bn(p["conv3"], out, 1, 0, relu=True, residual=residual)


def make_layer(pf, inplanes, planes, blocks, stride):
    layer = [make_bottle2neck(pf, inplanes, planes, stride, True, "stage")]
    inp = planes * 4
    for _ in range(blocks - 1):
        layer.append(make_bottle2neck(pf, inp, planes, 1, False, "normal"))
    return layer, inp


def make_encoder(pf):
    enc = {"stem": [make_conv(pf, 3, 32, 3), make_conv(pf, 32, 32, 3),
                    make_conv(pf, 32, 64, 3)]}
    inp = 64
    enc["layer1"], inp = make_layer(pf, inp, 64, 3, 1)
    enc["layer2"], inp = make_layer(pf, inp, 128, 4, 2)
    enc["layer3"], inp = make_layer(pf, inp, 256, 6, 2)
    enc["layer4"], inp = make_layer(pf, inp, 512, 3, 2)
    return enc


def run_encoder(enc, x):
    x = conv_bn(enc["stem"][0], x, 2, 1, relu=True)
    x = conv_bn(enc["stem"][1], x, 1, 1, relu=True)
    x = conv_bn(enc["stem"][2], x, 1, 1, relu=True)    # conv + bn1 + relu (folded)
    x = max_pool_nhwc(x, 3, 2, 1)
    feats = []
    for name in ("layer1", "layer2", "layer3", "layer4"):
        for blk in enc[name]:
            x = bottle2neck(blk, x)
        feats.append(x)
    return feats   # x1 (/4,256), x2 (/8,512), x3 (/16,1024), x4 (/32,2048)  -- NHWC


# --------------------------------------------------------------------------- FSEL decoder

def make_network(pf, channels=CHANNELS):
    net = {"enc": make_encoder(pf)}
    # self.up = Conv1x1(32->128)+BN, Conv3x3(128->128)+BN, ReLU
    net["up1"] = make_conv(pf, channels // 4, channels, 1)
    net["up2"] = make_conv(pf, channels, channels, 3)
    # Module2(2048, channels) -> 1-channel prediction p1
    net["m2_c1"] = make_conv(pf, 2048, channels, 1)
    net["m2_c2"] = make_conv(pf, channels, channels, 3)
    net["m2_pred"] = make_conv(pf, channels, 1, 3, bn=False, bias=True)

    def m1(in_ch, fold_tail=0):
        return {"reduce": make_conv(pf, in_ch, channels, 1, fold_tail=fold_tail),
                "c1": make_conv(pf, channels, channels, 3),
                "c2": make_conv(pf, channels, channels, 3)}

    # the 128-way channel broadcast of p1 is folded into the reduce weights (exact)
    net["m1_5"] = m1(2048 + channels, fold_tail=channels)
    net["m1_4"] = m1(1024 + channels)
    net["m1_3"] = m1(512 + channels)
    net["m1_2"] = m1(256 + channels)

    def m3(n_priors):
        return {"mix": make_conv(pf, channels + n_priors, channels, 3),
                "pred": make_conv(pf, channels, 1, 3, bn=False, bias=True)}

    net["m3_1"] = m3(1)
    net["m3_2"] = m3(2)
    net["m3_3"] = m3(3)
    return net


def module2(net, x):
    y = conv_bn(net["m2_c1"], x, 1, 0, relu=True)
    y = conv_bn(net["m2_c2"], y, 1, 1, relu=True)
    # TODO(synk): 1-channel prediction heads still ride a 128-lane tile (output sliced to 1 ch).
    return conv_bn(net["m2_pred"], y, 1, 1, relu=False)       # (N,H,W,1)


def module1_res(p, x):
    r = conv_bn(p["reduce"], x, 1, 0, relu=True)
    y = conv_bn(p["c1"], r, 1, 1, relu=True)
    return conv_bn(p["c2"], y, 1, 1, relu=True, residual=r)   # residual + ReLU fused


def up_block(net, x):
    y = conv_bn(net["up1"], x, 1, 0, relu=False)
    return conv_bn(net["up2"], y, 1, 1, relu=True)


def module3(p, feat, *priors):
    N, H, W, _ = feat.shape
    pr = [bilinear_resize_nhwc(q, H, W) for q in priors]
    z = jnp.concatenate([feat] + pr, axis=-1)
    y = conv_bn(p["mix"], z, 1, 1, relu=True)
    # prediction + first-prior residual fused into the pred conv's epilogue
    return conv_bn(p["pred"], y, 1, 1, relu=False, residual=pr[0])   # (N,H,W,1)


def network_forward(net, x_nchw, channels=CHANNELS):
    img_h, img_w = x_nchw.shape[2], x_nchw.shape[3]
    x = jnp.transpose(x_nchw, (0, 2, 3, 1)).astype(jnp.float32)   # NHWC once, end-to-end
    x1, x2, x3, x4 = run_encoder(net["enc"], x)

    p1 = module2(net, x4)
    x5_4 = p1   # (N,h,w,1); its 128-channel broadcast lives inside m1_5's folded weights

    x4d = module1_res(net["m1_5"], jnp.concatenate([x4, x5_4], axis=-1))
    x4_up = up_block(net, pixel_shuffle_nhwc(x4d, 2))
    x3d = module1_res(net["m1_4"], jnp.concatenate([x3, x4_up], axis=-1))
    x3_up = up_block(net, pixel_shuffle_nhwc(x3d, 2))
    x2d = module1_res(net["m1_3"], jnp.concatenate([x2, x3_up], axis=-1))
    x2_up = up_block(net, pixel_shuffle_nhwc(x2d, 2))
    x1d = module1_res(net["m1_2"], jnp.concatenate([x1, x2_up], axis=-1))

    x4p = module3(net["m3_1"], x4d, x5_4)
    x3p = module3(net["m3_1"], x3d, x4p)       # Module3_1 reused, as in the reference forward
    x2p = module3(net["m3_2"], x2d, x3p, x4p)
    x1p = module3(net["m3_3"], x1d, x2p, x3p, x4p)

    def out_map(m):
        y = bilinear_resize_nhwc(m, img_h, img_w)
        return jnp.transpose(y, (0, 3, 1, 2))                  # NCHW (N,1,H,W) like the reference

    return out_map(p1), out_map(x4p), out_map(x3p), out_map(x2p), out_map(x1p)


# --------------------------------------------------------------------------- main

if __name__ == "__main__":
    key = jax.random.PRNGKey(0)
    x = jax.random.normal(key, (2, 3, 64, 64), jnp.float32)    # NCHW, /32-divisible spatial

    pf = ParamFactory(seed=0)
    net = make_network(pf, channels=CHANNELS)

    outs = network_forward(net, x)
    outs = jax.block_until_ready(outs)

    assert all(o.shape == (2, 1, 64, 64) for o in outs), [o.shape for o in outs]
    assert all(bool(jnp.all(jnp.isfinite(o))) for o in outs)
    print("KERNEL_OK")
</pallas_src>

<mosaic_0001>
module attributes {stable_mosaic.version = 11 : i64} {
  func.func @_mm_kernel(%arg0: i32, %arg1: i32, %arg2: i32, %arg3: memref<256x128xbf16, #tpu.memory_space<vmem>>, %arg4: memref<128x128xbf16, #tpu.memory_space<vmem>>, %arg5: memref<1x128xf32, #tpu.memory_space<vmem>>, %arg6: memref<256x128xf32, #tpu.memory_space<vmem>>) attributes {dimension_semantics = [#tpu.dimension_semantics<parallel>, #tpu.dimension_semantics<parallel>, #tpu.dimension_semantics<arbitrary>], iteration_bounds = array<i64: 8, 1, 1>, scalar_prefetch = 0 : i64, scratch_operands = 0 : i64, tpu.core_type = #tpu.core_type<tc>, window_params = [{transform_indices = @transform_0, window_bounds = array<i64: 256, 128>}, {transform_indices = @transform_1, window_bounds = array<i64: 128, 128>}, {transform_indices = @transform_2, window_bounds = array<i64: 1, 128>}, {transform_indices = @transform_3, window_bounds = array<i64: 256, 128>}]} {
    %c0_i32 = arith.constant 0 : i32
    %0 = arith.cmpi eq, %arg2, %c0_i32 : i32
    %1 = arith.extui %0 : i1 to i32
    %c0_i32_0 = arith.constant 0 : i32
    %2 = arith.cmpi ne, %1, %c0_i32_0 : i32
    scf.if %2 {
      %cst_10 = arith.constant 0.000000e+00 : f32
      %12 = vector.broadcast %cst_10 : f32 to vector<256x128xf32>
      %c0_11 = arith.constant 0 : index
      %c0_12 = arith.constant 0 : index
      %13 = vector.load %arg6[%c0_11, %c0_12] : memref<256x128xf32, #tpu.memory_space<vmem>>, vector<256x128xf32>
      tpu.vector_store %arg6[%c0_11, %c0_12], %12 {strides = array<i32>} : memref<256x128xf32, #tpu.memory_space<vmem>>, vector<256x128xf32>,
    } else {
    }
    %c0 = arith.constant 0 : index
    %c0_1 = arith.constant 0 : index
    %3 = vector.load %arg6[%c0, %c0_1] : memref<256x128xf32, #tpu.memory_space<vmem>>, vector<256x128xf32>
    %c0_2 = arith.constant 0 : index
    %c0_3 = arith.constant 0 : index
    %4 = vector.load %arg3[%c0_2, %c0_3] : memref<256x128xbf16, #tpu.memory_space<vmem>>, vector<256x128xbf16>
    %c0_4 = arith.constant 0 : index
    %c0_5 = arith.constant 0 : index
    %5 = vector.load %arg4[%c0_4, %c0_5] : memref<128x128xbf16, #tpu.memory_space<vmem>>, vector<128x128xbf16>
    %cst = arith.constant dense<0.000000e+00> : vector<256x128xf32>
    %6 = tpu.matmul %4, %5, %cst {dimension_numbers = #tpu.dot_dimension_numbers<[1], [0], [0], [1], [0, 0, 1, 1], [], []>} : vector<256x128xbf16>, vector<128x128xbf16>, vector<256x128xf32> -> vector<256x128xf32>
    %7 = arith.addf %3, %6 : vector<256x128xf32>
    %c0_6 = arith.constant 0 : index
    %c0_7 = arith.constant 0 : index
    %8 = vector.load %arg6[%c0_6, %c0_7] : memref<256x128xf32, #tpu.memory_space<vmem>>, vector<256x128xf32>
    tpu.vector_store %arg6[%c0_6, %c0_7], %7 {strides = array<i32>} : memref<256x128xf32, #tpu.memory_space<vmem>>, vector<256x128xf32>,
    %c0_i32_8 = arith.constant 0 : i32
    %9 = arith.cmpi eq, %arg2, %c0_i32_8 : i32
    %10 = arith.extui %9 : i1 to i32
    %c0_i32_9 = arith.constant 0 : i32
    %11 = arith.cmpi ne, %10, %c0_i32_9 : i32
    scf.if %11 {
      %c0_10 = arith.constant 0 : index
      %c0_11 = arith.constant 0 : index
      %12 = vector.load %arg6[%c0_10, %c0_11] : memref<256x128xf32, #tpu.memory_space<vmem>>, vector<256x128xf32>
      %c0_12 = arith.constant 0 : index
      %c0_13 = arith.constant 0 : index
      %13 = vector.load %arg5[%c0_12, %c0_13] : memref<1x128xf32, #tpu.memory_space<vmem>>, vector<1x128xf32>
      %14 = vector.broadcast %13 : vector<1x128xf32> to vector<256x128xf32>
      %15 = arith.addf %12, %14 : vector<256x128xf32>
      %cst_14 = arith.constant 0.000000e+00 : f32
      %16 = vector.broadcast %cst_14 : f32 to vector<256x128xf32>
      %17 = arith.maximumf %15, %16 : vector<256x128xf32>
      %c0_15 = arith.constant 0 : index
      %c0_16 = arith.constant 0 : index
      %18 = vector.load %arg6[%c0_15, %c0_16] : memref<256x128xf32, #tpu.memory_space<vmem>>, vector<256x128xf32>
      tpu.vector_store %arg6[%c0_15, %c0_16], %17 {strides = array<i32>} : memref<256x128xf32, #tpu.memory_space<vmem>>, vector<256x128xf32>,
    } else {
    }
    return
  }
  func.func @transform_0(%arg0: i32, %arg1: i32, %arg2: i32) -> (i32, i32) {
    %c0_i32 = arith.constant 0 : i32
    return %arg0, %arg2 : i32, i32
  }
  func.func @transform_1(%arg0: i32, %arg1: i32, %arg2: i32) -> (i32, i32) {
    %c0_i32 = arith.constant 0 : i32
    return %arg2, %arg1 : i32, i32
  }
  func.func @transform_2(%arg0: i32, %arg1: i32, %arg2: i32) -> (i32, i32) {
    %c0_i32 = arith.constant 0 : i32
    %c0_i32_0 = arith.constant 0 : i32
    return %c0_i32, %arg1 : i32, i32
  }
  func.func @transform_3(%arg0: i32, %arg1: i32, %arg2: i32) -> (i32, i32) {
    %c0_i32 = arith.constant 0 : i32
    return %arg0, %arg1 : i32, i32
  }
}

</mosaic_0001>

<bundles_post_ra>
// kernel: _mm_affine.1
= control target key start
LH: loop header
LB: loop body
LE: loop exit
PB: predicated region body
PF: predicated region fallthrough
CT: control target
= control target key end

     0   :  { %8 = vsyncpa [#allocation3], 0  ;;  %s1459_s0 = inlined_call_operand.vmem [shape: bf16[2048,128], index: 0, kind: input, shape index: {}]   ;;  %s1460_s1 = inlined_call_operand.vmem [shape: bf16[128,128], index: 1, kind: input, shape index: {}]   ;;  %s1461_s2 = inlined_call_operand.vmem [shape: f32[1,128], index: 2, kind: input, shape index: {}]   ;;  %s1462_s3 = inlined_call_operand.hbm [shape: f32[2048,128], index: 3, kind: output, shape index: {}]  }
   0x1   :  { %10 = vsyncpa [#allocation3 + $0x1], 0  ;;  %s1245_s12 = smov 0   ;;  %s1247_s13 = smov 0  }
   0x2   :  { %s1249_s14 = smov 0   ;;  %s1251_s15 = smov 0  }
   0x3   :  { %s1253_s16 = smov 0   ;;  %s1255_s17 = smov 0  }
   0x4 LB: > { %s924_s18 = sadd.s32 4294967295, %s1221_s17   ;;  %s925_s19 = sadd.s32 4294967294, %s1221_s17   ;;  %s1221_s17 = sphi %s1255_s17, %s16_s17   ;;  %s1217_s16 = sphi %s1253_s16, %s1469_s16   ;;  %s1213_s15 = sphi %s1251_s15, %s1468_s15   ;;  %s1209_s14 = sphi %s1249_s14, %s1467_s14   ;;  %s1205_s13 = sphi %s1247_s13, %s1466_s13   ;;  %s1201_s12 = sphi %s1245_s12, %s1465_s12  }
   0x5   : > { %s35_s20 = sadd.s32 1, %s1217_s16  ;;  %s126_s21 = sadd.s32 1, %s1209_s14 }
   0x6   : > { %p37_p0 = scmp.ge.s32.totalorder %s35_s20, 8  ;;  %p136_p1 = scmp.ne.s32.totalorder %s1209_s14, %s1205_s13 }
   0x7   : > { %p137_p2 = scmp.eq.s32.totalorder %s924_s18, 7  ;;  %p142_p3 = scmp.ne.s32.totalorder %s1205_s13, %s1201_s12 }
   0x8   : > { %s1471_s20 = smov (%p37_p0, %s35_s20), 0  ;;  %p143_p5 = scmp.eq.s32.totalorder %s925_s19, 7 }
   0x9   : > { %p1285_p4 = por %p137_p2, %p136_p1  ;;  %s121_s23 = ssub.s32 %s1217_s16, %s1471_s20 }
   0xa   : > { %p930_p6 = scmp.ge.s32.totalorder %s1221_s17, 1  ;;  %p124_p7 = scmp.eq.s32.totalorder %s121_s23, 0 }
   0xb   : > { %p1292_p8 = por %p143_p5, %p142_p3  ;;  %p191_p9 = scmp.lt.s32.totalorder %s1221_s17, 9 }
   0xc   : > { %s1298_s25 = scalar_select %p124_p7, %s1209_s14, %s126_s21  }
   0xd   : > { %p192_p10 = pnand %p930_p6, %p191_p9 }
   0xe   : > { %s932_s7 = sshll.u32 (!%p192_p10), %s1213_s15, 5  ;;  %s226_s30 = sand.u32 (!%p192_p10), 1, %s1205_s13  }
   0xf   : > { %195 = sbr.rel (%p192_p10) target bundleno = 250 (0xfa), region = 32  ;;  %p230_p11 = scmp.lt.s32.totalorder (!%p192_p10), %s932_s7, 255 }
  0x10   : > { %s931_s6 = sshll.u32 (!%p192_p10), %s226_s30, 8  ;;  %s1059_s8 = sshll.u32 (!%p192_p10), %s1213_s15, 8 }
  0x11   : > { %s812_s11 = scalar_lea.hbm (!%p192_p10), %s1462_s3, %s1059_s8  ;;  %s800_s19 = scalar_lea.sflag (!%p192_p10), [#allocation3], %s226_s30 }
  0x12   : > { %s815_s15 = sshll.u32 (!%p192_p10), %s812_s11, 4  ;;  %s1163_s28 = scalar_lea.hbm (!%p192_p10), %s1462_s3, 2048  ;;  %s816_s15 = int_to_ptr.hbm [resolvable:$true] %s815_s15 }
  0x14   : > { %v1058_v0 = vld [vmem:[%s1460_s1 + $0x38] sm:$0xff]  ;;  %v1057_v1 = vld [vmem:[%s1460_s1 + $0x30] sm:$0xff]  ;;  %v1056_v2 = vld [vmem:[%s1460_s1 + $0x28] sm:$0xff]  ;;  %s1473_s7 = smov (!%p230_p11, %s932_s7), 255 }
  0x15   : > { %511 = vmatpush.bf16.msra.mxu0 %v1058_v0  ;;  %1060 = vmatpush.bf16.msra.mxu1 %v1058_v0  ;;  %v1055_v3 = vld [vmem:[%s1460_s1 + $0x20] sm:$0xff]  ;;  %v1054_v4 = vld [vmem:[%s1460_s1 + $0x18] sm:$0xff]  ;;  %v1053_v5 = vld [vmem:[%s1460_s1 + $0x10] sm:$0xff]  ;;  %s933_s21 = sshll.u32 %s1473_s7, 2  ;;  %s1356_s7 = scalar_lea.vmem [#allocation2], %s931_s6 }
  0x16   : > { %1061 = vmatpush.bf16.msra.mxu2 %v1058_v0  ;;  %1062 = vmatpush.bf16.msra.mxu3 %v1058_v0  ;;  %v1052_v6 = vld [vmem:[%s1460_s1 + $0x8] sm:$0xff]  ;;  %v1051_v7 = vld [vmem:[%s1460_s1] sm:$0xff]  ;;  %s1328_s29 = scalar_lea.vmem %s1459_s0, %s933_s21  ;;  %s813_s18 = sshll.u32 %s1356_s7, 4  ;;  %s814_s18 = int_to_ptr.vmem [resolvable:$true] %s813_s18 }
  0x17   : > { %v1035_v8 = vld [vmem:[%s1328_s29] sm:$0xff]  ;;  %v1036_v12 = vld [vmem:[%s1328_s29 + $0x8] sm:$0xff]  ;;  %v1037_v16 = vld [vmem:[%s1328_s29 + $0x10] sm:$0xff]  ;;  %s1157_s21 = sshra.s32 %s816_s15, 4  ;;  %s1158_s21 = int_to_ptr.hbm [resolvable:$true] %s1157_s21 }
  0x18   : > { %v1039_v9 = vld [vmem:[%s1328_s29 + $0x20] sm:$0xff]  ;;  %v1040_v13 = vld [vmem:[%s1328_s29 + $0x28] sm:$0xff]  ;;  %v1041_v17 = vld [vmem:[%s1328_s29 + $0x30] sm:$0xff]  ;;  %s1159_s23 = scalar_lea.hbm %s1158_s21, 256  ;;  %p1164_p1 = scmp.lt.s32.totalorder %s1158_s21, %s1462_s3 }
  0x19   : > { %512 = vmatpush.bf16.msra.mxu0 %v1057_v1  ;;  %1063 = vmatpush.bf16.msra.mxu1 %v1057_v1  ;;  %v1043_v10 = vld [vmem:[%s1328_s29 + $0x40] sm:$0xff]  ;;  %v1044_v14 = vld [vmem:[%s1328_s29 + $0x48] sm:$0xff]  ;;  %v1045_v18 = vld [vmem:[%s1328_s29 + $0x50] sm:$0xff]  ;;  %p1160_p12 = scmp.ne.s32.totalorder %s1158_s21, %s1159_s23  ;;  %p1165_p2 = scmp.lt.s32.totalorder %s1163_s28, %s1159_s23 }
  0x1a   : > { %1064 = vmatpush.bf16.msra.mxu2 %v1057_v1  ;;  %1065 = vmatpush.bf16.msra.mxu3 %v1057_v1  ;;  %v1047_v11 = vld [vmem:[%s1328_s29 + $0x60] sm:$0xff]  ;;  %v1048_v15 = vld [vmem:[%s1328_s29 + $0x68] sm:$0xff]  ;;  %v1049_v19 = vld [vmem:[%s1328_s29 + $0x70] sm:$0xff] }
  0x1b   : > { %v1038_v20 = vld [vmem:[%s1328_s29 + $0x18] sm:$0xff]  ;;  %v1350_v24 = vld [vmem:[%s1461_s2] ss:$0 sm:$0xff]  ;;  %p1161_p13 = pnand %p1160_p12, %p1285_p4  ;;  %p1166_p3 = por %p1165_p2, %p1164_p1 }
  0x1c   : > { %v1042_v21 = vld [vmem:[%s1328_s29 + $0x38] sm:$0xff] }
  0x1d   : > { %513 = vmatpush.bf16.msra.mxu0 %v1056_v2  ;;  %1066 = vmatpush.bf16.msra.mxu1 %v1056_v2  ;;  %v1046_v22 = vld [vmem:[%s1328_s29 + $0x58] sm:$0xff]  ;;  %p1162_p0 = pneg %p1161_p13 }
  0x1e   : > { %1067 = vmatpush.bf16.msra.mxu2 %v1056_v2  ;;  %1068 = vmatpush.bf16.msra.mxu3 %v1056_v2  ;;  %v1050_v23 = vld [vmem:[%s1328_s29 + $0x78] sm:$0xff] }
  0x1f   : > { %p1167_p5 = pnand %p1166_p3, %p1162_p0 }
  0x21   : > { %514 = vmatpush.bf16.msra.mxu0 %v1055_v3  ;;  %1069 = vmatpush.bf16.msra.mxu1 %v1055_v3 }
  0x22   : > { %1070 = vmatpush.bf16.msra.mxu2 %v1055_v3  ;;  %1071 = vmatpush.bf16.msra.mxu3 %v1055_v3 }
  0x25   : > { %515 = vmatpush.bf16.msra.mxu0 %v1054_v4  ;;  %1072 = vmatpush.bf16.msra.mxu1 %v1054_v4 }
  0x26   : > { %1073 = vmatpush.bf16.msra.mxu2 %v1054_v4  ;;  %1074 = vmatpush.bf16.msra.mxu3 %v1054_v4 }
  0x29   : > { %516 = vmatpush.bf16.msra.mxu0 %v1053_v5  ;;  %1075 = vmatpush.bf16.msra.mxu1 %v1053_v5 }
  0x2a   : > { %1076 = vmatpush.bf16.msra.mxu2 %v1053_v5  ;;  %1077 = vmatpush.bf16.msra.mxu3 %v1053_v5 }
  0x2d   : > { %517 = vmatpush.bf16.msra.mxu0 %v1052_v6  ;;  %1078 = vmatpush.bf16.msra.mxu1 %v1052_v6 }
  0x2e   : > { %1079 = vmatpush.bf16.msra.mxu2 %v1052_v6  ;;  %1080 = vmatpush.bf16.msra.mxu3 %v1052_v6 }
  0x31   : > { %518 = vmatpush.bf16.msra.mxu0 %v1051_v7  ;;  %1081 = vmatpush.bf16.msra.mxu1 %v1051_v7 }
  0x32   : > { %1082 = vmatpush.bf16.msra.mxu2 %v1051_v7  ;;  %1083 = vmatpush.bf16.msra.mxu3 %v1051_v7 }
  0x34   : > { %519 = vmatmul.bf16.vlgmr.msra.gmra.mxu0 %v1035_v8  ;;  %539 = vmatmul.bf16.vlgmr.msra.gmra.mxu1 %v1039_v9 }
  0x35   : > { %559 = vmatmul.bf16.vlgmr.msra.gmra.mxu2 %v1043_v10  ;;  %579 = vmatmul.bf16.vlgmr.msra.gmra.mxu3 %v1047_v11 }
  0x44   : > { %524 = vmatmul.bf16.gmra.mxu0 %v1036_v12  ;;  %544 = vmatmul.bf16.gmra.mxu1 %v1040_v13 }
  0x45   : > { %564 = vmatmul.bf16.gmra.mxu2 %v1044_v14  ;;  %584 = vmatmul.bf16.gmra.mxu3 %v1048_v15 }
  0x54   : > { %529 = vmatmul.bf16.gmra.mxu0 %v1037_v16  ;;  %549 = vmatmul.bf16.gmra.mxu1 %v1041_v17 }
  0x55   : > { %569 = vmatmul.bf16.gmra.mxu2 %v1045_v18  ;;  %589 = vmatmul.bf16.gmra.mxu3 %v1049_v19 }
  0x64   : > { %534 = vmatmul.bf16.gmra.mxu0 %v1038_v20  ;;  %554 = vmatmul.bf16.gmra.mxu1 %v1042_v21 }
  0x65   : > { %574 = vmatmul.bf16.gmra.mxu2 %v1046_v22  ;;  %594 = vmatmul.bf16.gmra.mxu3 %v1050_v23 }
  0xb1   : > { %v520_v25 = vpop.f32.mrf.mxu0  ;;  %v540_v26 = vpop.f32.mrf.mxu1 }
  0xb2   : > { %v703_v27 = vadd.f32 %v1350_v24, %v520_v25  ;;  %v711_v28 = vadd.f32 %v1350_v24, %v540_v26 }
  0xb4   : > { %v735_v29 = vmax.f32 %v703_v27, 0.0  ;;  %v743_v30 = vmax.f32 %v711_v28, 0.0 }
  0xb6   : > { %767 = vst [vmem:[%s1356_s7] sm:$0xff] %v735_v29 }
  0xb7   : > { %775 = vst [vmem:[%s1356_s7 + $0x40] sm:$0xff] %v743_v30 }
  0xb8   : > { %v560_v31 = vpop.f32.mrf.mxu2  ;;  %v580_v32 = vpop.f32.mrf.mxu3 }
  0xb9   : > { %v522_v33 = vpop.f32.mrf.mxu0  ;;  %v542_v34 = vpop.f32.mrf.mxu1  ;;  %v719_v35 = vadd.f32 %v1350_v24, %v560_v31  ;;  %v727_v36 = vadd.f32 %v1350_v24, %v580_v32 }
  0xba   : > { %v704_v37 = vadd.f32 %v1350_v24, %v522_v33  ;;  %v712_v38 = vadd.f32 %v1350_v24, %v542_v34 }
  0xbb   : > { %v751_v39 = vmax.f32 %v719_v35, 0.0  ;;  %v759_v40 = vmax.f32 %v727_v36, 0.0 }
  0xbc   : > { %v736_v41 = vmax.f32 %v704_v37, 0.0  ;;  %v744_v42 = vmax.f32 %v712_v38, 0.0 }
  0xbd   : > { %783 = vst [vmem:[%s1356_s7 + $0x80] sm:$0xff] %v751_v39 }
  0xbe   : > { %791 = vst [vmem:[%s1356_s7 + $0xc0] sm:$0xff] %v759_v40 }
  0xbf   : > { %768 = vst [vmem:[%s1356_s7 + $0x8] sm:$0xff] %v736_v41 }
  0xc0   : > { %v562_v43 = vpop.f32.mrf.mxu2  ;;  %v582_v44 = vpop.f32.mrf.mxu3  ;;  %776 = vst [vmem:[%s1356_s7 + $0x48] sm:$0xff] %v744_v42 }
  0xc1   : > { %v525_v45 = vpop.f32.mrf.mxu0  ;;  %v545_v46 = vpop.f32.mrf.mxu1  ;;  %v720_v47 = vadd.f32 %v1350_v24, %v562_v43  ;;  %v728_v48 = vadd.f32 %v1350_v24, %v582_v44 }
  0xc2   : > { %v705_v49 = vadd.f32 %v1350_v24, %v525_v45  ;;  %v713_v50 = vadd.f32 %v1350_v24, %v545_v46 }
  0xc3   : > { %v752_v51 = vmax.f32 %v720_v47, 0.0  ;;  %v760_v52 = vmax.f32 %v728_v48, 0.0 }
  0xc4   : > { %v737_v53 = vmax.f32 %v705_v49, 0.0  ;;  %v745_v54 = vmax.f32 %v713_v50, 0.0 }
  0xc5   : > { %784 = vst [vmem:[%s1356_s7 + $0x88] sm:$0xff] %v752_v51 }
  0xc6   : > { %792 = vst [vmem:[%s1356_s7 + $0xc8] sm:$0xff] %v760_v52 }
  0xc7   : > { %769 = vst [vmem:[%s1356_s7 + $0x10] sm:$0xff] %v737_v53 }
  0xc8   : > { %v565_v55 = vpop.f32.mrf.mxu2  ;;  %v585_v56 = vpop.f32.mrf.mxu3  ;;  %777 = vst [vmem:[%s1356_s7 + $0x50] sm:$0xff] %v745_v54 }
  0xc9   : > { %v527_v57 = vpop.f32.mrf.mxu0  ;;  %v547_v58 = vpop.f32.mrf.mxu1  ;;  %v721_v59 = vadd.f32 %v1350_v24, %v565_v55  ;;  %v729_v60 = vadd.f32 %v1350_v24, %v585_v56 }
  0xca   : > { %v706_v61 = vadd.f32 %v1350_v24, %v527_v57  ;;  %v714_v62 = vadd.f32 %v1350_v24, %v547_v58 }
  0xcb   : > { %v753_v63 = vmax.f32 %v721_v59, 0.0  ;;  %v761_v0 = vmax.f32 %v729_v60, 0.0 }
  0xcc   : > { %v738_v1 = vmax.f32 %v706_v61, 0.0  ;;  %v746_v2 = vmax.f32 %v714_v62, 0.0 }
  0xcd   : > { %785 = vst [vmem:[%s1356_s7 + $0x90] sm:$0xff] %v753_v63 }
  0xce   : > { %793 = vst [vmem:[%s1356_s7 + $0xd0] sm:$0xff] %v761_v0 }
  0xcf   : > { %770 = vst [vmem:[%s1356_s7 + $0x18] sm:$0xff] %v738_v1 }
  0xd0   : > { %v567_v3 = vpop.f32.mrf.mxu2  ;;  %v587_v4 = vpop.f32.mrf.mxu3  ;;  %778 = vst [vmem:[%s1356_s7 + $0x58] sm:$0xff] %v746_v2 }
  0xd1   : > { %v530_v5 = vpop.f32.mrf.mxu0  ;;  %v550_v6 = vpop.f32.mrf.mxu1  ;;  %v722_v7 = vadd.f32 %v1350_v24, %v567_v3  ;;  %v730_v8 = vadd.f32 %v1350_v24, %v587_v4 }
  0xd2   : > { %v707_v9 = vadd.f32 %v1350_v24, %v530_v5  ;;  %v715_v10 = vadd.f32 %v1350_v24, %v550_v6 }
  0xd3   : > { %v754_v11 = vmax.f32 %v722_v7, 0.0  ;;  %v762_v12 = vmax.f32 %v730_v8, 0.0 }
  0xd4   : > { %v739_v13 = vmax.f32 %v707_v9, 0.0  ;;  %v747_v14 = vmax.f32 %v715_v10, 0.0 }
  0xd5   : > { %786 = vst [vmem:[%s1356_s7 + $0x98] sm:$0xff] %v754_v11 }
  0xd6   : > { %794 = vst [vmem:[%s1356_s7 + $0xd8] sm:$0xff] %v762_v12 }
  0xd7   : > { %771 = vst [vmem:[%s1356_s7 + $0x20] sm:$0xff] %v739_v13 }
  0xd8   : > { %v570_v15 = vpop.f32.mrf.mxu2  ;;  %v590_v16 = vpop.f32.mrf.mxu3  ;;  %779 = vst [vmem:[%s1356_s7 + $0x60] sm:$0xff] %v747_v14 }
  0xd9   : > { %v532_v17 = vpop.f32.mrf.mxu0  ;;  %v552_v18 = vpop.f32.mrf.mxu1  ;;  %v723_v19 = vadd.f32 %v1350_v24, %v570_v15  ;;  %v731_v20 = vadd.f32 %v1350_v24, %v590_v16 }
  0xda   : > { %v708_v21 = vadd.f32 %v1350_v24, %v532_v17  ;;  %v716_v22 = vadd.f32 %v1350_v24, %v552_v18 }
  0xdb   : > { %v755_v23 = vmax.f32 %v723_v19, 0.0  ;;  %v763_v25 = vmax.f32 %v731_v20, 0.0 }
  0xdc   : > { %v740_v26 = vmax.f32 %v708_v21, 0.0  ;;  %v748_v27 = vmax.f32 %v716_v22, 0.0 }
  0xdd   : > { %787 = vst [vmem:[%s1356_s7 + $0xa0] sm:$0xff] %v755_v23 }
  0xde   : > { %795 = vst [vmem:[%s1356_s7 + $0xe0] sm:$0xff] %v763_v25 }
  0xdf   : > { %772 = vst [vmem:[%s1356_s7 + $0x28] sm:$0xff] %v740_v26 }
  0xe0   : > { %v572_v28 = vpop.f32.mrf.mxu2  ;;  %v592_v29 = vpop.f32.mrf.mxu3  ;;  %780 = vst [vmem:[%s1356_s7 + $0x68] sm:$0xff] %v748_v27 }
  0xe1   : > { %v535_v30 = vpop.f32.mrf.mxu0  ;;  %v555_v31 = vpop.f32.mrf.mxu1  ;;  %v724_v32 = vadd.f32 %v1350_v24, %v572_v28  ;;  %v732_v33 = vadd.f32 %v1350_v24, %v592_v29 }
  0xe2   : > { %v709_v34 = vadd.f32 %v1350_v24, %v535_v30  ;;  %v717_v35 = vadd.f32 %v1350_v24, %v555_v31 }
  0xe3   : > { %v756_v36 = vmax.f32 %v724_v32, 0.0  ;;  %v764_v37 = vmax.f32 %v732_v33, 0.0 }
  0xe4   : > { %v741_v38 = vmax.f32 %v709_v34, 0.0  ;;  %v749_v39 = vmax.f32 %v717_v35, 0.0 }
  0xe5   : > { %788 = vst [vmem:[%s1356_s7 + $0xa8] sm:$0xff] %v756_v36 }
  0xe6   : > { %796 = vst [vmem:[%s1356_s7 + $0xe8] sm:$0xff] %v764_v37 }
  0xe7   : > { %773 = vst [vmem:[%s1356_s7 + $0x30] sm:$0xff] %v741_v38 }
  0xe8   : > { %v575_v40 = vpop.f32.mrf.mxu2  ;;  %v595_v41 = vpop.f32.mrf.mxu3  ;;  %781 = vst [vmem:[%s1356_s7 + $0x70] sm:$0xff] %v749_v39 }
  0xe9   : > { %v537_v42 = vpop.f32.mrf.mxu0  ;;  %v557_v43 = vpop.f32.mrf.mxu1  ;;  %v725_v44 = vadd.f32 %v1350_v24, %v575_v40  ;;  %v733_v45 = vadd.f32 %v1350_v24, %v595_v41 }
  0xea   : > { %v710_v46 = vadd.f32 %v1350_v24, %v537_v42  ;;  %v718_v47 = vadd.f32 %v1350_v24, %v557_v43 }
  0xeb   : > { %v757_v48 = vmax.f32 %v725_v44, 0.0  ;;  %v765_v49 = vmax.f32 %v733_v45, 0.0 }
  0xec   : > { %v742_v50 = vmax.f32 %v710_v46, 0.0  ;;  %v750_v51 = vmax.f32 %v718_v47, 0.0 }
  0xed   : > { %789 = vst [vmem:[%s1356_s7 + $0xb0] sm:$0xff] %v757_v48 }
  0xee   : > { %797 = vst [vmem:[%s1356_s7 + $0xf0] sm:$0xff] %v765_v49 }
  0xef   : > { %774 = vst [vmem:[%s1356_s7 + $0x38] sm:$0xff] %v742_v50 }
  0xf0   : > { %v577_v52 = vpop.f32.mrf.mxu2  ;;  %v597_v53 = vpop.f32.mrf.mxu3  ;;  %782 = vst [vmem:[%s1356_s7 + $0x78] sm:$0xff] %v750_v51 }
  0xf1   : > { %v726_v54 = vadd.f32 %v1350_v24, %v577_v52  ;;  %v734_v55 = vadd.f32 %v1350_v24, %v597_v53 }
  0xf3   : > { %v758_v56 = vmax.f32 %v726_v54, 0.0  ;;  %v766_v57 = vmax.f32 %v734_v55, 0.0 }
  0xf5   : > { %790 = vst [vmem:[%s1356_s7 + $0xb8] sm:$0xff] %v758_v56 }
  0xf6   : > { %798 = vst [vmem:[%s1356_s7 + $0xf8] sm:$0xff] %v766_v57 }
  0xf7   : > { %1170 = shalt.err (!%p1167_p5)
}
  0xf8   : > { %s1223_s30 = smov 128   ;;  %s1224_s5 = smov 8  }
  0xf9   : > { %1084 = dma.vmem_to_hbm [thread:$0]  (%p1285_p4), %s814_s18, 4096, %s816_s15, %s800_s19, %s1223_s30, %s1223_s30, %s1224_s5  }
  0xfa PF: > { %p1090_p6 = scmp.ge.s32.totalorder %s1221_s17, 2  ;;  %s830_s6 = sand.u32 1, %s1201_s12  }
  0xfb   : > { %s831_s7 = scalar_lea.sflag [#allocation3], %s830_s6 }
  0xfc   : > { %p1087_p7 = pnand %p1090_p6, %p1292_p8 }
  0xfe   : > { %p1088_p9 = pneg %p1087_p7 }
 0x100   : > { %1196 = dma.done.wait (%p1088_p9), %s831_s7, 4096  }
 0x101   : > { %1198 = vsyncadd (%p1088_p9), %s831_s7, 4294963200  ;;  %s16_s17 = sadd.s32 1, %s1221_s17   ;;  %s1465_s12 = smov %s1205_s13 }
 0x102   : > { %p13_p10 = scmp.ge.s32.totalorder %s16_s17, 10   ;;  %s1466_s13 = smov %s1209_s14 }
 0x103   : > { %s1467_s14 = smov %s1298_s25  ;;  %s1468_s15 = smov %s1217_s16 }
 0x104   : > { %s1469_s16 = smov %s1471_s20  ;;  %15 = sbr.rel (!%p13_p10) target bundleno = 4 (0x4), region = 81 }
 0x109   :  { %837 = vsyncpa [#allocation3], 1 }
 0x10a   :  { %839 = vsyncpa [#allocation3 + $0x1], 1 }

</bundles_post_ra>
